<compile_context>
chip_gen: v6e
topology: v6e:2x2x1
jax: 0.10.0
libtpu: 0.0.40
codegen_flags: <defaults>
</compile_context>

<pallas_src>
import jax
import jax.numpy as jnp
from jax import lax
from jax.experimental import pallas as pl
from jax.experimental.pallas import tpu as pltpu

# ---------------------------------------------------------------------------
# Small synthetic CLIP-like configuration
# ---------------------------------------------------------------------------
B = 2                       # batch
C, H, W = 3, 16, 16         # image (NCHW)
IMG_FLAT = C * H * W        # 768
VIS_DIM = 128               # clip_model.visual.output_dim
CTX_DIM = 128               # clip_model.ln_final.weight.shape[0]
HID = VIS_DIM // 16         # meta_net hidden dim (= 8)
N_CTX = 4                   # number of learned context tokens
N_CLS = 6                   # number of class names
L_SUF = 11                  # suffix token length (class name + '.' + padding)
SEQ = 1 + N_CTX + L_SUF     # full prompt length (= 16)


# ---------------------------------------------------------------------------
# Single fused kernel:
#   image encode -> L2 norm -> meta_net -> prompt pool (algebraic) ->
#   text encode stand-in -> L2 norm -> scaled logits.
# No grid: whole batch in one step.
# ---------------------------------------------------------------------------
def _cocoop_fused_kernel(x_ref, wimg_ref, ctx_ref, prefix_ref, suffix_ref,
                         w1_ref, b1_ref, w2_ref, b2_ref, wtext_ref,
                         scale_ref, logits_ref):
    # --- synthetic image encoder (fused): flattened image @ projection (MXU)
    imf = jnp.dot(x_ref[...], wimg_ref[...],
                  preferred_element_type=jnp.float32)              # (B, VIS_DIM)
    # L2 normalize (rsqrt -> EUP slot, overlaps with following MXU work)
    imf_n = imf * lax.rsqrt(jnp.sum(imf * imf, axis=-1, keepdims=True))

    # --- meta_net on the whole batch: Linear -> ReLU -> Linear
    h = jnp.dot(imf_n, w1_ref[...],
                preferred_element_type=jnp.float32) + b1_ref[...]  # (B, HID)
    h = jnp.maximum(h, 0.0)
    bias = jnp.dot(h, w2_ref[...],
                   preferred_element_type=jnp.float32) + b2_ref[...]  # (B, CTX_DIM)

    # --- algebraic prompt construction + mean-pool + linear text encoder
    # pooled[b,c] = (prefix[c].sum + suffix[c].sum + ctx.sum + N_CTX*bias[b]) / SEQ
    inv_seq = jnp.float32(1.0 / SEQ)
    class_pool = (jnp.sum(prefix_ref[...], axis=1)
                  + jnp.sum(suffix_ref[...], axis=1)
                  + jnp.sum(ctx_ref[...], axis=0, keepdims=True)) * inv_seq  # (N_CLS, CTX_DIM)
    class_base = jnp.dot(class_pool, wtext_ref[...],
                         preferred_element_type=jnp.float32)        # (N_CLS, VIS_DIM)
    bias_proj = jnp.dot(bias, wtext_ref[...],
                        preferred_element_type=jnp.float32) * (N_CTX * inv_seq)  # (B, VIS_DIM)

    # tfeat[b, c, :] = class_base[c] + bias_proj[b]
    tfeat = class_base[None, :, :] + bias_proj[:, None, :]          # (B, N_CLS, VIS_DIM)
    tfeat_n = tfeat * lax.rsqrt(jnp.sum(tfeat * tfeat, axis=-1, keepdims=True))

    # logits[b, c] = scale * imf_n[b] . tfeat_n[b, c]   (VPU mul + XLU reduce)
    scale = scale_ref[0, 0]
    logits = scale * jnp.sum(imf_n[:, None, :] * tfeat_n, axis=-1)  # (B, N_CLS)
    logits_ref[...] = logits                                        # single block store


def cocoop_forward(image, p):
    bsz = image.shape[0]
    x = image.reshape(bsz, -1).astype(jnp.float32)                  # (B, IMG_FLAT)
    scale = jnp.exp(p["logit_scale"]).astype(jnp.float32).reshape(1, 1)

    vmem = pl.BlockSpec(memory_space=pltpu.MemorySpace.VMEM)
    smem = pl.BlockSpec(memory_space=pltpu.MemorySpace.SMEM)

    return pl.pallas_call(
        _cocoop_fused_kernel,
        out_shape=jax.ShapeDtypeStruct((bsz, N_CLS), jnp.float32),
        in_specs=[vmem,   # x (flattened image)
                  vmem,   # w_img (synthetic image encoder projection)
                  vmem,   # ctx
                  vmem,   # token_prefix
                  vmem,   # token_suffix
                  vmem,   # meta_net.linear1 W
                  vmem,   # meta_net.linear1 b
                  vmem,   # meta_net.linear2 W
                  vmem,   # meta_net.linear2 b
                  vmem,   # text projection (stand-in)
                  smem],  # logit_scale.exp()
        out_specs=vmem,
    )(x, p["w_img"], p["ctx"], p["prefix"], p["suffix"],
      p["w1"], p["b1"], p["w2"], p["b2"], p["w_text"], scale)


# ---------------------------------------------------------------------------
# Deterministic parameter initialization (mirrors shapes in __init__)
# ---------------------------------------------------------------------------
def init_params(key):
    ks = jax.random.split(key, 10)
    p = {}
    # PromptLearner.ctx ~ Normal(std=0.02), shape (n_ctx, ctx_dim)
    p["ctx"] = 0.02 * jax.random.normal(ks[0], (N_CTX, CTX_DIM), jnp.float32)
    # token_prefix / token_suffix buffers (token_embedding outputs)
    p["prefix"] = 0.02 * jax.random.normal(ks[1], (N_CLS, 1, CTX_DIM), jnp.float32)
    p["suffix"] = 0.02 * jax.random.normal(ks[2], (N_CLS, L_SUF, CTX_DIM), jnp.float32)
    # meta_net: Linear(vis_dim, vis_dim // 16), ReLU, Linear(vis_dim // 16, ctx_dim)
    lim1 = 1.0 / jnp.sqrt(VIS_DIM)
    p["w1"] = jax.random.uniform(ks[3], (VIS_DIM, HID), jnp.float32, -lim1, lim1)
    p["b1"] = jax.random.uniform(ks[4], (1, HID), jnp.float32, -lim1, lim1)
    lim2 = 1.0 / jnp.sqrt(HID)
    p["w2"] = jax.random.uniform(ks[5], (HID, CTX_DIM), jnp.float32, -lim2, lim2)
    p["b2"] = jax.random.uniform(ks[6], (1, CTX_DIM), jnp.float32, -lim2, lim2)
    # synthetic encoder stand-in weights
    p["w_img"] = jax.random.normal(ks[7], (IMG_FLAT, VIS_DIM), jnp.float32) / jnp.sqrt(IMG_FLAT)
    p["w_text"] = jax.random.normal(ks[8], (CTX_DIM, VIS_DIM), jnp.float32) / jnp.sqrt(CTX_DIM)
    # logit_scale initialized as in CLIP: ln(1/0.07)
    p["logit_scale"] = jnp.float32(jnp.log(1.0 / 0.07))
    return p


# ---------------------------------------------------------------------------
# Pure-JAX reference mirroring CoCoOp._forward (same synthetic encoders,
# naive broadcast/concat/mean path -> validates the algebraic kernel form)
# ---------------------------------------------------------------------------
def cocoop_reference(image, p):
    x = image.reshape(image.shape[0], -1).astype(jnp.float32) @ p["w_img"]
    imf = x / jnp.linalg.norm(x, axis=-1, keepdims=True)
    h = jnp.maximum(imf @ p["w1"] + p["b1"], 0.0)
    bias = h @ p["w2"] + p["b2"]                      # (B, CTX_DIM)
    ctx_shifted = p["ctx"][None] + bias[:, None]      # (B, N_CTX, CTX_DIM)
    scale = jnp.exp(p["logit_scale"])
    logits = []
    for i in range(image.shape[0]):
        ctx_i = jnp.broadcast_to(ctx_shifted[i][None], (N_CLS, N_CTX, CTX_DIM))
        pts_i = jnp.concatenate([p["prefix"], ctx_i, p["suffix"]], axis=1)
        tf = pts_i.mean(axis=1) @ p["w_text"]
        tf = tf / jnp.linalg.norm(tf, axis=-1, keepdims=True)
        logits.append(scale * imf[i] @ tf.T)
    return jnp.stack(logits)


if __name__ == "__main__":
    key = jax.random.PRNGKey(0)
    k_img, k_par = jax.random.split(key)
    image = jax.random.normal(k_img, (B, C, H, W), jnp.float32)   # NCHW like PyTorch
    params = init_params(k_par)

    logits = jax.block_until_ready(cocoop_forward(image, params))
    ref = jax.block_until_ready(cocoop_reference(image, params))

    assert logits.shape == (B, N_CLS), logits.shape
    assert jnp.allclose(logits, ref, rtol=2e-3, atol=2e-3), (
        f"max abs diff {jnp.max(jnp.abs(logits - ref))}")
    print("KERNEL_OK")
</pallas_src>

<mosaic_0001>
module attributes {stable_mosaic.version = 11 : i64} {
  func.func @_cocoop_fused_kernel(%arg0: memref<2x768xf32, #tpu.memory_space<vmem>>, %arg1: memref<768x128xf32, #tpu.memory_space<vmem>>, %arg2: memref<4x128xf32, #tpu.memory_space<vmem>>, %arg3: memref<6x1x128xf32, #tpu.memory_space<vmem>>, %arg4: memref<6x11x128xf32, #tpu.memory_space<vmem>>, %arg5: memref<128x8xf32, #tpu.memory_space<vmem>>, %arg6: memref<1x8xf32, #tpu.memory_space<vmem>>, %arg7: memref<8x128xf32, #tpu.memory_space<vmem>>, %arg8: memref<1x128xf32, #tpu.memory_space<vmem>>, %arg9: memref<128x128xf32, #tpu.memory_space<vmem>>, %arg10: memref<1x1xf32, #tpu.memory_space<smem>>, %arg11: memref<2x6xf32, #tpu.memory_space<vmem>>) attributes {dimension_semantics = [], scalar_prefetch = 0 : i64, scratch_operands = 0 : i64, tpu.core_type = #tpu.core_type<tc>} {
    %c0 = arith.constant 0 : index
    %c0_0 = arith.constant 0 : index
    %0 = vector.load %arg0[%c0, %c0_0] : memref<2x768xf32, #tpu.memory_space<vmem>>, vector<2x768xf32>
    %c0_1 = arith.constant 0 : index
    %c0_2 = arith.constant 0 : index
    %1 = vector.load %arg1[%c0_1, %c0_2] : memref<768x128xf32, #tpu.memory_space<vmem>>, vector<768x128xf32>
    %cst = arith.constant dense<0.000000e+00> : vector<2x128xf32>
    %2 = tpu.matmul %0, %1, %cst {dimension_numbers = #tpu.dot_dimension_numbers<[1], [0], [0], [1], [0, 0, 1, 1], [], []>} : vector<2x768xf32>, vector<768x128xf32>, vector<2x128xf32> -> vector<2x128xf32>
    %3 = arith.mulf %2, %2 : vector<2x128xf32>
    %cst_3 = arith.constant dense<0.000000e+00> : vector<2xf32>
    %4 = vector.multi_reduction <add>, %3, %cst_3 [1] : vector<2x128xf32> to vector<2xf32>
    %5 = vector.shape_cast %4 : vector<2xf32> to vector<2x1xf32>
    %6 = math.rsqrt %5 : vector<2x1xf32>
    %7 = vector.broadcast %6 : vector<2x1xf32> to vector<2x128xf32>
    %8 = arith.mulf %2, %7 : vector<2x128xf32>
    %c0_4 = arith.constant 0 : index
    %c0_5 = arith.constant 0 : index
    %9 = vector.load %arg5[%c0_4, %c0_5] : memref<128x8xf32, #tpu.memory_space<vmem>>, vector<128x8xf32>
    %cst_6 = arith.constant dense<0.000000e+00> : vector<2x8xf32>
    %10 = tpu.matmul %8, %9, %cst_6 {dimension_numbers = #tpu.dot_dimension_numbers<[1], [0], [0], [1], [0, 0, 1, 1], [], []>} : vector<2x128xf32>, vector<128x8xf32>, vector<2x8xf32> -> vector<2x8xf32>
    %c0_7 = arith.constant 0 : index
    %c0_8 = arith.constant 0 : index
    %11 = vector.load %arg6[%c0_7, %c0_8] : memref<1x8xf32, #tpu.memory_space<vmem>>, vector<1x8xf32>
    %12 = vector.broadcast %11 : vector<1x8xf32> to vector<2x8xf32>
    %13 = arith.addf %10, %12 : vector<2x8xf32>
    %cst_9 = arith.constant 0.000000e+00 : f32
    %14 = vector.broadcast %cst_9 : f32 to vector<2x8xf32>
    %15 = arith.maximumf %13, %14 : vector<2x8xf32>
    %c0_10 = arith.constant 0 : index
    %c0_11 = arith.constant 0 : index
    %16 = vector.load %arg7[%c0_10, %c0_11] : memref<8x128xf32, #tpu.memory_space<vmem>>, vector<8x128xf32>
    %cst_12 = arith.constant dense<0.000000e+00> : vector<2x128xf32>
    %17 = tpu.matmul %15, %16, %cst_12 {dimension_numbers = #tpu.dot_dimension_numbers<[1], [0], [0], [1], [0, 0, 1, 1], [], []>} : vector<2x8xf32>, vector<8x128xf32>, vector<2x128xf32> -> vector<2x128xf32>
    %c0_13 = arith.constant 0 : index
    %c0_14 = arith.constant 0 : index
    %18 = vector.load %arg8[%c0_13, %c0_14] : memref<1x128xf32, #tpu.memory_space<vmem>>, vector<1x128xf32>
    %19 = vector.broadcast %18 : vector<1x128xf32> to vector<2x128xf32>
    %20 = arith.addf %17, %19 : vector<2x128xf32>
    %c0_15 = arith.constant 0 : index
    %c0_16 = arith.constant 0 : index
    %c0_17 = arith.constant 0 : index
    %21 = vector.load %arg3[%c0_15, %c0_16, %c0_17] : memref<6x1x128xf32, #tpu.memory_space<vmem>>, vector<6x1x128xf32>
    %cst_18 = arith.constant dense<0.000000e+00> : vector<6x128xf32>
    %22 = vector.multi_reduction <add>, %21, %cst_18 [1] : vector<6x1x128xf32> to vector<6x128xf32>
    %c0_19 = arith.constant 0 : index
    %c0_20 = arith.constant 0 : index
    %c0_21 = arith.constant 0 : index
    %23 = vector.load %arg4[%c0_19, %c0_20, %c0_21] : memref<6x11x128xf32, #tpu.memory_space<vmem>>, vector<6x11x128xf32>
    %cst_22 = arith.constant dense<0.000000e+00> : vector<6x128xf32>
    %24 = vector.multi_reduction <add>, %23, %cst_22 [1] : vector<6x11x128xf32> to vector<6x128xf32>
    %25 = arith.addf %22, %24 : vector<6x128xf32>
    %c0_23 = arith.constant 0 : index
    %c0_24 = arith.constant 0 : index
    %26 = vector.load %arg2[%c0_23, %c0_24] : memref<4x128xf32, #tpu.memory_space<vmem>>, vector<4x128xf32>
    %cst_25 = arith.constant dense<0.000000e+00> : vector<128xf32>
    %27 = vector.multi_reduction <add>, %26, %cst_25 [0] : vector<4x128xf32> to vector<128xf32>
    %28 = vector.shape_cast %27 : vector<128xf32> to vector<1x128xf32>
    %29 = vector.broadcast %28 : vector<1x128xf32> to vector<6x128xf32>
    %30 = arith.addf %25, %29 : vector<6x128xf32>
    %cst_26 = arith.constant 6.250000e-02 : f32
    %31 = vector.broadcast %cst_26 : f32 to vector<6x128xf32>
    %32 = arith.mulf %30, %31 : vector<6x128xf32>
    %c0_27 = arith.constant 0 : index
    %c0_28 = arith.constant 0 : index
    %33 = vector.load %arg9[%c0_27, %c0_28] : memref<128x128xf32, #tpu.memory_space<vmem>>, vector<128x128xf32>
    %cst_29 = arith.constant dense<0.000000e+00> : vector<6x128xf32>
    %34 = tpu.matmul %32, %33, %cst_29 {dimension_numbers = #tpu.dot_dimension_numbers<[1], [0], [0], [1], [0, 0, 1, 1], [], []>} : vector<6x128xf32>, vector<128x128xf32>, vector<6x128xf32> -> vector<6x128xf32>
    %c0_30 = arith.constant 0 : index
    %c0_31 = arith.constant 0 : index
    %35 = vector.load %arg9[%c0_30, %c0_31] : memref<128x128xf32, #tpu.memory_space<vmem>>, vector<128x128xf32>
    %cst_32 = arith.constant dense<0.000000e+00> : vector<2x128xf32>
    %36 = tpu.matmul %20, %35, %cst_32 {dimension_numbers = #tpu.dot_dimension_numbers<[1], [0], [0], [1], [0, 0, 1, 1], [], []>} : vector<2x128xf32>, vector<128x128xf32>, vector<2x128xf32> -> vector<2x128xf32>
    %cst_33 = arith.constant 4.000000e+00 : f32
    %cst_34 = arith.constant 6.250000e-02 : f32
    %37 = arith.mulf %cst_33, %cst_34 : f32
    %38 = vector.broadcast %37 : f32 to vector<2x128xf32>
    %39 = arith.mulf %36, %38 : vector<2x128xf32>
    %40 = vector.shape_cast %34 : vector<6x128xf32> to vector<1x6x128xf32>
    %41 = vector.shape_cast %39 : vector<2x128xf32> to vector<2x1x128xf32>
    %42 = vector.broadcast %40 : vector<1x6x128xf32> to vector<2x6x128xf32>
    %43 = vector.broadcast %41 : vector<2x1x128xf32> to vector<2x6x128xf32>
    %44 = arith.addf %42, %43 : vector<2x6x128xf32>
    %45 = arith.mulf %44, %44 : vector<2x6x128xf32>
    %cst_35 = arith.constant dense<0.000000e+00> : vector<2x6xf32>
    %46 = vector.multi_reduction <add>, %45, %cst_35 [2] : vector<2x6x128xf32> to vector<2x6xf32>
    %47 = vector.shape_cast %46 : vector<2x6xf32> to vector<2x6x1xf32>
    %48 = math.rsqrt %47 : vector<2x6x1xf32>
    %49 = vector.broadcast %48 : vector<2x6x1xf32> to vector<2x6x128xf32>
    %50 = arith.mulf %44, %49 : vector<2x6x128xf32>
    %c0_36 = arith.constant 0 : index
    %c0_37 = arith.constant 0 : index
    %51 = memref.load %arg10[%c0_36, %c0_37] : memref<1x1xf32, #tpu.memory_space<smem>>
    %52 = vector.shape_cast %8 : vector<2x128xf32> to vector<2x1x128xf32>
    %53 = vector.broadcast %52 : vector<2x1x128xf32> to vector<2x6x128xf32>
    %54 = arith.mulf %53, %50 : vector<2x6x128xf32>
    %cst_38 = arith.constant dense<0.000000e+00> : vector<2x6xf32>
    %55 = vector.multi_reduction <add>, %54, %cst_38 [2] : vector<2x6x128xf32> to vector<2x6xf32>
    %56 = vector.broadcast %51 : f32 to vector<2x6xf32>
    %57 = arith.mulf %56, %55 : vector<2x6xf32>
    %c0_39 = arith.constant 0 : index
    %c0_40 = arith.constant 0 : index
    %58 = vector.load %arg11[%c0_39, %c0_40] : memref<2x6xf32, #tpu.memory_space<vmem>>, vector<2x6xf32>
    tpu.vector_store %arg11[%c0_39, %c0_40], %57 {strides = array<i32>} : memref<2x6xf32, #tpu.memory_space<vmem>>, vector<2x6xf32>,
    return
  }
}

</mosaic_0001>

<bundles_post_ra>
// kernel: tpu_custom_call.1
= control target key start
LH: loop header
LB: loop body
LE: loop exit
PB: predicated region body
PF: predicated region fallthrough
CT: control target
= control target key end

     0   :  { %17 = vsyncpa [#allocation4], 0  ;;  %s1740_s0 = inlined_call_operand.vmem [shape: f32[2,768], index: 0, kind: input, shape index: {}]   ;;  %s1741_s1 = inlined_call_operand.hbm [shape: f32[768,128], index: 1, kind: input, shape index: {}]   ;;  %s1742_s2 = inlined_call_operand.vmem [shape: f32[4,128], index: 2, kind: input, shape index: {}]   ;;  %s1743_s3 = inlined_call_operand.vmem [shape: f32[6,1,128], index: 3, kind: input, shape index: {}]   ;;  %s1744_s4 = inlined_call_operand.vmem [shape: f32[6,11,128], index: 4, kind: input, shape index: {}]   ;;  %s1745_s5 = inlined_call_operand.vmem [shape: f32[128,8], index: 5, kind: input, shape index: {}]   ;;  %s1746_s6 = inlined_call_operand.vmem [shape: f32[1,8], index: 6, kind: input, shape index: {}]   ;;  %s1747_s7 = inlined_call_operand.vmem [shape: f32[8,128], index: 7, kind: input, shape index: {}]   ;;  %s1748_s8 = inlined_call_operand.vmem [shape: f32[1,128], index: 8, kind: input, shape index: {}]   ;;  %s1749_s9 = inlined_call_operand.vmem [shape: f32[128,128], index: 9, kind: input, shape index: {}]   ;;  %s1750_s10 = inlined_call_operand.<no memory space> [shape: f32[1,1], index: 10, kind: input, shape index: {}]   ;;  %s1751_s11 = inlined_call_operand.hbm [shape: f32[2,6], index: 11, kind: output, shape index: {}]  }
   0x1   :  { %18 = vsyncpa [#allocation5], 0  ;;  %s1392_s17 = smov [#allocation3]  }
   0x2   :  { %s26_s18 = sshll.u32 %s1392_s17, 4  ;;  %s27_s18 = int_to_ptr.vmem [resolvable:$true] %s26_s18 }
   0x3   :  { %s1356_s19 = scalar_lea.vmem %s27_s18, 12288  ;;  %p1361_p1 = scmp.lt.s32.totalorder %s27_s18, %s27_s18 }
   0x4   :  { %p1357_p0 = scmp.ne.s32.totalorder %s27_s18, %s1356_s19  ;;  %p1362_p2 = scmp.lt.s32.totalorder %s1356_s19, %s1356_s19 }
   0x6   :  { %p1363_p3 = por %p1362_p2, %p1361_p1 }
   0x8   :  { %p1364_p4 = pnand %p1363_p3, %p1357_p0 }
   0xa   :  { %1367 = shalt.err (!%p1364_p4)
}
   0xb   :  { %s1393_s20 = smov 128   ;;  %s1394_s21 = smov 8  }
   0xc   :  { %32 = dma.hbm_to_vmem [thread:$0]  %s1741_s1, 12288, %s27_s18, [#allocation4], %s1393_s20, %s1393_s20, %s1394_s21  }
   0xd   :  { %1388 = dma.done.wait [#allocation4], 12288  }
   0xe   :  { %1389 = vsyncadd [#allocation4], 4294955008  ;;  %v87_v0 = vld [vmem:[#allocation3 + $0xf8] sm:$0xff]  ;;  %v86_v4 = vld [vmem:[#allocation3 + $0xf0] sm:$0xff]  ;;  %v1395_v30 = vmov 1983009808   ;;  %v158_v32 = vlaneseq }
   0xf   :  { %v119_v1 = vld [vmem:[#allocation3 + $0x1f8] sm:$0xff]  ;;  %1065 = vmatprep.subr.mxu0 %v87_v0  ;;  %v118_v5 = vld [vmem:[#allocation3 + $0x1f0] sm:$0xff]  ;;  %v85_v8 = vld [vmem:[#allocation3 + $0xe8] sm:$0xff]  ;;  %v156_v31 = vunpack.c.l.s4 %v1395_v30  ;;  %vm396_vm0 = vcmask 1041408   ;;  %vm1397_vm1 = vmmov 0   ;;  %vm504_vm2 = vcmask 64512  }
  0x10   :  { %v71_v2 = vld [vmem:[#allocation3 + $0x78] sm:$0xff]  ;;  %1100 = vmatprep.subr.mxu1 %v119_v1  ;;  %v70_v6 = vld [vmem:[#allocation3 + $0x70] sm:$0xff]  ;;  %v117_v9 = vld [vmem:[#allocation3 + $0x1e8] sm:$0xff]  ;;  %v1464_v42 = vshrl.u32 %v158_v32, 7  ;;  %vm658_vm3 = vcmask 1043456   ;;  %vm602_vm4 = vcmask 1042432  }
  0x11   :  { %v103_v3 = vld [vmem:[#allocation3 + $0x178] sm:$0xff]  ;;  %1066 = vmatpush3.msra.mxu0 %v71_v2  ;;  %v102_v7 = vld [vmem:[#allocation3 + $0x170] sm:$0xff]  ;;  %v69_v10 = vld [vmem:[#allocation3 + $0x68] sm:$0xff]  ;;  %v157_v41 = vunpack.c.0.s8 %v156_v31  ;;  %vm973_vm5 = vcmask 1045504   ;;  %s1399_s19 = smov [#allocation6]   ;;  %vm1041_vm6 = vcmask 1041409  }
  0x12   :  { %1101 = vmatpush3.msra.mxu1 %v103_v3  ;;  %1067 = vmatprep.subr.mxu0 %v86_v4  ;;  %v101_v11 = vld [vmem:[#allocation3 + $0x168] sm:$0xff]  ;;  %v84_v12 = vld [vmem:[#allocation3 + $0xe0] sm:$0xff]  ;;  %v83_v16 = vld [vmem:[#allocation3 + $0xd8] sm:$0xff]  ;;  %vm1044_vm7 = vcmask 41984  }
  0x13   :  { %1102 = vmatprep.subr.mxu1 %v118_v5  ;;  %1068 = vmatpush3.msra.mxu0 %v70_v6  ;;  %v116_v13 = vld [vmem:[#allocation3 + $0x1e0] sm:$0xff]  ;;  %v115_v17 = vld [vmem:[#allocation3 + $0x1d8] sm:$0xff]  ;;  %v82_v20 = vld [vmem:[#allocation3 + $0xd0] sm:$0xff]  ;;  %v160_v51 = vsub.s32 %v157_v41, %v1464_v42 }
  0x14   :  { %1103 = vmatpush3.msra.mxu1 %v102_v7  ;;  %1069 = vmatprep.subr.mxu0 %v85_v8  ;;  %v68_v14 = vld [vmem:[#allocation3 + $0x60] sm:$0xff]  ;;  %v67_v18 = vld [vmem:[#allocation3 + $0x58] sm:$0xff]  ;;  %v114_v21 = vld [vmem:[#allocation3 + $0x1d0] sm:$0xff] }
  0x15   :  { %1104 = vmatprep.subr.mxu1 %v117_v9  ;;  %v100_v15 = vld [vmem:[#allocation3 + $0x160] sm:$0xff]  ;;  %1070 = vmatpush3.msra.mxu0 %v69_v10  ;;  %v99_v19 = vld [vmem:[#allocation3 + $0x158] sm:$0xff]  ;;  %v66_v22 = vld [vmem:[#allocation3 + $0x50] sm:$0xff] }
  0x16   :  { %1105 = vmatpush3.msra.mxu1 %v101_v11  ;;  %1071 = vmatprep.subr.mxu0 %v84_v12  ;;  %v98_v23 = vld [vmem:[#allocation3 + $0x150] sm:$0xff]  ;;  %v81_v24 = vld [vmem:[#allocation3 + $0xc8] sm:$0xff]  ;;  %v80_v28 = vld [vmem:[#allocation3 + $0xc0] sm:$0xff] }
  0x17   :  { %1106 = vmatprep.subr.mxu1 %v116_v13  ;;  %1072 = vmatpush3.msra.mxu0 %v68_v14  ;;  %v113_v25 = vld [vmem:[#allocation3 + $0x1c8] sm:$0xff]  ;;  %v112_v29 = vld [vmem:[#allocation3 + $0x1c0] sm:$0xff]  ;;  %v79_v35 = vld [vmem:[#allocation3 + $0xb8] sm:$0xff] }
  0x18   :  { %1107 = vmatpush3.msra.mxu1 %v100_v15  ;;  %1073 = vmatprep.subr.mxu0 %v83_v16  ;;  %v65_v26 = vld [vmem:[#allocation3 + $0x48] sm:$0xff]  ;;  %v64_v33 = vld [vmem:[#allocation3 + $0x40] sm:$0xff]  ;;  %v111_v36 = vld [vmem:[#allocation3 + $0x1b8] sm:$0xff] }
  0x19   :  { %1108 = vmatprep.subr.mxu1 %v115_v17  ;;  %1074 = vmatpush3.msra.mxu0 %v67_v18  ;;  %v97_v27 = vld [vmem:[#allocation3 + $0x148] sm:$0xff]  ;;  %v96_v34 = vld [vmem:[#allocation3 + $0x140] sm:$0xff]  ;;  %v63_v37 = vld [vmem:[#allocation3 + $0x38] sm:$0xff] }
  0x1a   :  { %1109 = vmatpush3.msra.mxu1 %v99_v19  ;;  %1075 = vmatprep.subr.mxu0 %v82_v20  ;;  %v95_v38 = vld [vmem:[#allocation3 + $0x138] sm:$0xff]  ;;  %v78_v39 = vld [vmem:[#allocation3 + $0xb0] sm:$0xff]  ;;  %v77_v45 = vld [vmem:[#allocation3 + $0xa8] sm:$0xff] }
  0x1b   :  { %1110 = vmatprep.subr.mxu1 %v114_v21  ;;  %1076 = vmatpush3.msra.mxu0 %v66_v22  ;;  %v110_v40 = vld [vmem:[#allocation3 + $0x1b0] sm:$0xff]  ;;  %v109_v46 = vld [vmem:[#allocation3 + $0x1a8] sm:$0xff]  ;;  %v76_v49 = vld [vmem:[#allocation3 + $0xa0] sm:$0xff] }
  0x1c   :  { %1111 = vmatpush3.msra.mxu1 %v98_v23  ;;  %1077 = vmatprep.subr.mxu0 %v81_v24  ;;  %v62_v43 = vld [vmem:[#allocation3 + $0x30] sm:$0xff]  ;;  %v61_v47 = vld [vmem:[#allocation3 + $0x28] sm:$0xff]  ;;  %v108_v50 = vld [vmem:[#allocation3 + $0x1a0] sm:$0xff] }
  0x1d   :  { %1112 = vmatprep.subr.mxu1 %v113_v25  ;;  %1078 = vmatpush3.msra.mxu0 %v65_v26  ;;  %v94_v44 = vld [vmem:[#allocation3 + $0x130] sm:$0xff]  ;;  %v93_v48 = vld [vmem:[#allocation3 + $0x128] sm:$0xff]  ;;  %v60_v52 = vld [vmem:[#allocation3 + $0x20] sm:$0xff] }
  0x1e   :  { %1113 = vmatpush3.msra.mxu1 %v97_v27  ;;  %1079 = vmatprep.subr.mxu0 %v80_v28  ;;  %v92_v53 = vld [vmem:[#allocation3 + $0x120] sm:$0xff]  ;;  %v75_v55 = vld [vmem:[#allocation3 + $0x98] sm:$0xff]  ;;  %v74_v60 = vld [vmem:[#allocation3 + $0x90] sm:$0xff] }
  0x1f   :  { %1114 = vmatprep.subr.mxu1 %v112_v29  ;;  %1080 = vmatpush3.msra.mxu0 %v64_v33  ;;  %v54_v54 = vld [vmem:[%s1740_s0] sm:$0xff]  ;;  %v107_v56 = vld [vmem:[#allocation3 + $0x198] sm:$0xff]  ;;  %v106_v61 = vld [vmem:[#allocation3 + $0x190] sm:$0xff] }
  0x20   :  { %1115 = vmatpush3.msra.mxu1 %v96_v34  ;;  %1081 = vmatprep.subr.mxu0 %v79_v35  ;;  %v154_v57 = vcombine.high %v54_v54, %v54_v54  ;;  %v59_v58 = vld [vmem:[#allocation3 + $0x18] sm:$0xff]  ;;  %v161_v62 = vrot.slane %v54_v54, %v160_v51  ;;  %v58_v63 = vld [vmem:[#allocation3 + $0x10] sm:$0xff]  ;;  %v73_v2 = vld [vmem:[#allocation3 + $0x88] sm:$0xff] }
  0x21   :  { %1116 = vmatprep.subr.mxu1 %v111_v36  ;;  %1082 = vmatpush3.msra.mxu0 %v63_v37  ;;  %v91_v59 = vld [vmem:[#allocation3 + $0x118] sm:$0xff]  ;;  %v90_v0 = vld [vmem:[#allocation3 + $0x110] sm:$0xff]  ;;  %v105_v3 = vld [vmem:[#allocation3 + $0x188] sm:$0xff] }
  0x22   :  { %1117 = vmatpush3.msra.mxu1 %v95_v38  ;;  %1083 = vmatprep.subr.mxu0 %v78_v39  ;;  %v168_v1 = vrot.slane %v154_v57, %v160_v51  ;;  %v57_v4 = vld [vmem:[#allocation3 + $0x8] sm:$0xff]  ;;  %v72_v6 = vld [vmem:[#allocation3 + $0x80] sm:$0xff]  ;;  %v169_v8 = vcombine.high %v161_v62, %v161_v62  ;;  %v151_v12 = vld [vmem:[#allocation3 + $0x2f8] sm:$0xff] }
  0x23   :  { %1118 = vmatprep.subr.mxu1 %v110_v40  ;;  %1084 = vmatpush3.msra.mxu0 %v62_v43  ;;  %v89_v5 = vld [vmem:[#allocation3 + $0x108] sm:$0xff]  ;;  %v104_v7 = vld [vmem:[#allocation3 + $0x180] sm:$0xff]  ;;  %v135_v14 = vld [vmem:[#allocation3 + $0x278] sm:$0xff] }
  0x24   :  { %1119 = vmatpush3.msra.mxu1 %v94_v44  ;;  %1085 = vmatprep.subr.mxu0 %v77_v45  ;;  %v56_v9 = vld [vmem:[#allocation3] sm:$0xff]  ;;  %v170_v10 = vcombine.high %v168_v1, %v168_v1  ;;  %v1473_v13 = vld.sshfl [vmem:[%s1740_s0 + $0x8] sm:$0x33 pattern:$0x76325410]  ;;  %v150_v16 = vld [vmem:[#allocation3 + $0x2f0] sm:$0xff] }
  0x25   :  { %1120 = vmatprep.subr.mxu1 %v109_v46  ;;  %1086 = vmatpush3.msra.mxu0 %v61_v47  ;;  %v88_v11 = vld [vmem:[#allocation3 + $0x100] sm:$0xff]  ;;  %v178_v15 = vcombine.high %v1473_v13, %v1473_v13  ;;  %v134_v17 = vld [vmem:[#allocation3 + $0x270] sm:$0xff]  ;;  %v149_v18 = vld [vmem:[#allocation3 + $0x2e8] sm:$0xff] }
  0x26   :  { %1121 = vmatpush3.msra.mxu1 %v93_v48  ;;  %1087 = vmatprep.subr.mxu0 %v76_v49  ;;  %v133_v19 = vld [vmem:[#allocation3 + $0x268] sm:$0xff]  ;;  %v148_v20 = vld [vmem:[#allocation3 + $0x2e0] sm:$0xff]  ;;  %v147_v22 = vld [vmem:[#allocation3 + $0x2d8] sm:$0xff]  ;;  %v1396_v49 = vmov 0.0  }
  0x27   :  { %1122 = vmatprep.subr.mxu1 %v108_v50  ;;  %1088 = vmatpush3.msra.mxu0 %v60_v52  ;;  %v132_v21 = vld [vmem:[#allocation3 + $0x260] sm:$0xff]  ;;  %v131_v23 = vld [vmem:[#allocation3 + $0x258] sm:$0xff]  ;;  %v146_v24 = vld [vmem:[#allocation3 + $0x2d0] sm:$0xff] }
  0x28   :  { %1123 = vmatpush3.msra.mxu1 %v92_v53  ;;  %1089 = vmatprep.subr.mxu0 %v75_v55  ;;  %v130_v25 = vld [vmem:[#allocation3 + $0x250] sm:$0xff]  ;;  %v145_v26 = vld [vmem:[#allocation3 + $0x2c8] sm:$0xff]  ;;  %v144_v28 = vld [vmem:[#allocation3 + $0x2c0] sm:$0xff] }
  0x29   :  { %1124 = vmatprep.subr.mxu1 %v107_v56  ;;  %1090 = vmatpush3.msra.mxu0 %v59_v58  ;;  %v129_v27 = vld [vmem:[#allocation3 + $0x248] sm:$0xff]  ;;  %v128_v29 = vld [vmem:[#allocation3 + $0x240] sm:$0xff]  ;;  %v143_v30 = vld [vmem:[#allocation3 + $0x2b8] sm:$0xff] }
  0x2a   :  { %1125 = vmatpush3.msra.mxu1 %v91_v59  ;;  %1091 = vmatprep.subr.mxu0 %v74_v60  ;;  %v127_v31 = vld [vmem:[#allocation3 + $0x238] sm:$0xff]  ;;  %v142_v33 = vld [vmem:[#allocation3 + $0x2b0] sm:$0xff]  ;;  %v141_v35 = vld [vmem:[#allocation3 + $0x2a8] sm:$0xff] }
  0x2b   :  { %1126 = vmatprep.subr.mxu1 %v106_v61  ;;  %1092 = vmatpush3.msra.mxu0 %v58_v63  ;;  %v126_v34 = vld [vmem:[#allocation3 + $0x230] sm:$0xff]  ;;  %v125_v36 = vld [vmem:[#allocation3 + $0x228] sm:$0xff]  ;;  %v140_v37 = vld [vmem:[#allocation3 + $0x2a0] sm:$0xff] }
  0x2c   :  { %1127 = vmatpush3.msra.mxu1 %v90_v0  ;;  %1093 = vmatprep.subr.mxu0 %v73_v2  ;;  %v124_v38 = vld [vmem:[#allocation3 + $0x220] sm:$0xff]  ;;  %v139_v39 = vld [vmem:[#allocation3 + $0x298] sm:$0xff]  ;;  %v138_v41 = vld [vmem:[#allocation3 + $0x290] sm:$0xff] }
  0x2d   :  { %1128 = vmatprep.subr.mxu1 %v105_v3  ;;  %1094 = vmatpush3.msra.mxu0 %v57_v4  ;;  %v123_v40 = vld [vmem:[#allocation3 + $0x218] sm:$0xff]  ;;  %v122_v43 = vld [vmem:[#allocation3 + $0x210] sm:$0xff]  ;;  %v137_v44 = vld [vmem:[#allocation3 + $0x288] sm:$0xff] }
  0x2e   :  { %1129 = vmatpush3.msra.mxu1 %v89_v5  ;;  %1095 = vmatprep.subr.mxu0 %v72_v6  ;;  %v121_v45 = vld [vmem:[#allocation3 + $0x208] sm:$0xff]  ;;  %v136_v46 = vld [vmem:[#allocation3 + $0x280] sm:$0xff]  ;;  %v417_v48 = vld [vmem:[%s1745_s5 + $0x78] sm:$0xff] }
  0x2f   :  { %1130 = vmatprep.subr.mxu1 %v104_v7  ;;  %1096 = vmatpush3.msra.mxu0 %v56_v9  ;;  %v120_v47 = vld [vmem:[#allocation3 + $0x200] sm:$0xff]  ;;  %v416_v50 = vld [vmem:[%s1745_s5 + $0x70] sm:$0xff]  ;;  %v415_v51 = vld [vmem:[%s1745_s5 + $0x68] sm:$0xff] }
  0x30   :  { %249 = vmatprep.mubr.f32.mxu0 %v169_v8  ;;  %1131 = vmatpush3.msra.mxu1 %v88_v11  ;;  %v414_v52 = vld [vmem:[%s1745_s5 + $0x60] sm:$0xff]  ;;  %v413_v53 = vld [vmem:[%s1745_s5 + $0x58] sm:$0xff]  ;;  %v412_v54 = vld [vmem:[%s1745_s5 + $0x50] sm:$0xff] }
  0x31   :  { %319 = vmatprep.mubr.f32.mxu1 %v170_v10  ;;  %250 = vmatmul.mubr.f32.vlgmr.msra.gmra.mxu0 %v161_v62  ;;  %v411_v55 = vld [vmem:[%s1745_s5 + $0x48] sm:$0xff]  ;;  %v410_v56 = vld [vmem:[%s1745_s5 + $0x40] sm:$0xff]  ;;  %v409_v6 = vld [vmem:[%s1745_s5 + $0x38] sm:$0xff] }
  0x32   :  { %320 = vmatmul.mubr.f32.vlgmr.msra.gmra.mxu1 %v168_v1  ;;  %1135 = vmatprep.subr.mxu0 %v151_v12  ;;  %v408_v7 = vld [vmem:[%s1745_s5 + $0x30] sm:$0xff]  ;;  %v407_v8 = vld [vmem:[%s1745_s5 + $0x28] sm:$0xff]  ;;  %v406_v9 = vld [vmem:[%s1745_s5 + $0x20] sm:$0xff] }
  0x33   :  { %389 = vmatprep.mubr.f32.mxu0 %v178_v15  ;;  %1136 = vmatpush3.msra.mxu0 %v135_v14  ;;  %v405_v10 = vld [vmem:[%s1745_s5 + $0x18] sm:$0xff]  ;;  %v404_v11 = vld [vmem:[%s1745_s5 + $0x10] sm:$0xff]  ;;  %v403_v12 = vld [vmem:[%s1745_s5 + $0x8] sm:$0xff] }
  0x34   :  { %1137 = vmatprep.subr.mxu0 %v150_v16  ;;  %1223 = vmatprep.subr.mxu1 %v1396_v49 }
  0x35   :  { %1138 = vmatpush3.msra.mxu0 %v134_v17  ;;  %1224 = vmatpush3.msra.mxu1 %v417_v48  ;;  %v496_v17 = vld [vmem:[%s1747_s7] sm:$0xff]  ;;  %v596_v48 = vld [vmem:[%s1744_s4 + $0x30] sm:$0xff] }
  0x36   :  { %1139 = vmatprep.subr.mxu0 %v149_v18  ;;  %1225 = vmatprep.subr.mxu1 %v1396_v49  ;;  %v747_v18 = vld [vmem:[%s1749_s9 + $0x78] sm:$0xff] }
  0x37   :  { %1140 = vmatpush3.msra.mxu0 %v133_v19  ;;  %1226 = vmatpush3.msra.mxu1 %v416_v50  ;;  %v746_v19 = vld [vmem:[%s1749_s9 + $0x70] sm:$0xff]  ;;  %v597_v50 = vld [vmem:[%s1744_s4 + $0x38] sm:$0x7] }
  0x38   :  { %1141 = vmatprep.subr.mxu0 %v148_v20  ;;  %1227 = vmatprep.subr.mxu1 %v1396_v49  ;;  %v745_v20 = vld [vmem:[%s1749_s9 + $0x68] sm:$0xff] }
  0x39   :  { %1142 = vmatpush3.msra.mxu0 %v132_v21  ;;  %1228 = vmatpush3.msra.mxu1 %v415_v51  ;;  %v744_v21 = vld [vmem:[%s1749_s9 + $0x60] sm:$0xff]  ;;  %v599_v51 = vld [vmem:[%s1744_s4 + $0x48] sm:$0x7] }
  0x3a   :  { %1143 = vmatprep.subr.mxu0 %v147_v22  ;;  %1229 = vmatprep.subr.mxu1 %v1396_v49  ;;  %v743_v22 = vld [vmem:[%s1749_s9 + $0x58] sm:$0xff] }
  0x3b   :  { %1144 = vmatpush3.msra.mxu0 %v131_v23  ;;  %1230 = vmatpush3.msra.mxu1 %v414_v52  ;;  %v742_v23 = vld [vmem:[%s1749_s9 + $0x50] sm:$0xff] }
  0x3c   :  { %1145 = vmatprep.subr.mxu0 %v146_v24  ;;  %1231 = vmatprep.subr.mxu1 %v1396_v49  ;;  %v741_v24 = vld [vmem:[%s1749_s9 + $0x48] sm:$0xff] }
  0x3d   :  { %1146 = vmatpush3.msra.mxu0 %v130_v25  ;;  %1232 = vmatpush3.msra.mxu1 %v413_v53  ;;  %v740_v25 = vld [vmem:[%s1749_s9 + $0x40] sm:$0xff] }
  0x3e   :  { %1147 = vmatprep.subr.mxu0 %v145_v26  ;;  %1233 = vmatprep.subr.mxu1 %v1396_v49  ;;  %v739_v26 = vld [vmem:[%s1749_s9 + $0x38] sm:$0xff] }
  0x3f   :  { %1148 = vmatpush3.msra.mxu0 %v129_v27  ;;  %1234 = vmatpush3.msra.mxu1 %v412_v54  ;;  %v738_v27 = vld [vmem:[%s1749_s9 + $0x30] sm:$0xff]  ;;  %v1398_v54 = vmov 1966171168  }
  0x40   :  { %1149 = vmatprep.subr.mxu0 %v144_v28  ;;  %1235 = vmatprep.subr.mxu1 %v1396_v49  ;;  %v737_v28 = vld [vmem:[%s1749_s9 + $0x28] sm:$0xff] }
  0x41   :  { %1150 = vmatpush3.msra.mxu0 %v128_v29  ;;  %1236 = vmatpush3.msra.mxu1 %v411_v55  ;;  %v736_v29 = vld [vmem:[%s1749_s9 + $0x20] sm:$0xff]  ;;  %v669_v55 = vunpack.c.l.s4 %v1398_v54 }
  0x42   :  { %1151 = vmatprep.subr.mxu0 %v143_v30  ;;  %1237 = vmatprep.subr.mxu1 %v1396_v49  ;;  %v735_v30 = vld [vmem:[%s1749_s9 + $0x18] sm:$0xff]  ;;  %v582_v54 = vld [vmem:[%s1743_s3 + $0x4] sm:$0x1] }
  0x43   :  { %1152 = vmatpush3.msra.mxu0 %v127_v31  ;;  %1238 = vmatpush3.msra.mxu1 %v410_v56  ;;  %v734_v31 = vld [vmem:[%s1749_s9 + $0x10] sm:$0xff]  ;;  %v598_v56 = vld [vmem:[%s1744_s4 + $0x40] sm:$0xff] }
  0x44   :  { %1153 = vmatprep.subr.mxu0 %v142_v33  ;;  %1239 = vmatprep.subr.mxu1 %v1396_v49  ;;  %v1062_v33 = vld [vmem:[%s1746_s6] ss:$0 sm:$0xff] }
  0x45   :  { %1154 = vmatpush3.msra.mxu0 %v126_v34  ;;  %1240 = vmatpush3.msra.mxu1 %v409_v6 }
  0x46   :  { %1155 = vmatprep.subr.mxu0 %v141_v35  ;;  %1255 = vmatprep.mubr.msk.f32.mxu1 %vm1397_vm1, %v1396_v49 }
  0x47   :  { %1156 = vmatpush3.msra.mxu0 %v125_v36  ;;  %1241 = vmatprep.subr.mxu1 %v1396_v49 }
  0x48   :  { %1157 = vmatprep.subr.mxu0 %v140_v37  ;;  %1242 = vmatpush3.msra.mxu1 %v408_v7 }
  0x49   :  { %1158 = vmatpush3.msra.mxu0 %v124_v38  ;;  %1243 = vmatprep.subr.mxu1 %v1396_v49  ;;  %v657_v38 = vld [vmem:[%s1742_s2] sm:$0xf] }
  0x4a   :  { %1159 = vmatprep.subr.mxu0 %v139_v39  ;;  %1244 = vmatpush3.msra.mxu1 %v407_v8  ;;  %v659_v39 = vsel %vm658_vm3, %v657_v38, 0.0 }
  0x4b   :  { %1160 = vmatpush3.msra.mxu0 %v123_v40  ;;  %1245 = vmatprep.subr.mxu1 %v1396_v49  ;;  %v660_v40 = vrot.slane %v659_v39, 4 }
  0x4c   :  { %1161 = vmatprep.subr.mxu0 %v138_v41  ;;  %1246 = vmatpush3.msra.mxu1 %v406_v9  ;;  %v591_v41 = vld [vmem:[%s1744_s4 + $0x8] sm:$0x7] }
  0x4d   :  { %1162 = vmatpush3.msra.mxu0 %v122_v43  ;;  %1247 = vmatprep.subr.mxu1 %v1396_v49  ;;  %v593_v43 = vld [vmem:[%s1744_s4 + $0x18] sm:$0x7]  ;;  %v603_v52 = vsel %vm602_vm4, %v591_v41, 0.0  ;;  %v661_v53 = vadd.f32 %v660_v40, %v659_v39 }
  0x4e   :  { %1163 = vmatprep.subr.mxu0 %v137_v44  ;;  %1248 = vmatpush3.msra.mxu1 %v405_v10  ;;  %v595_v44 = vld [vmem:[%s1744_s4 + $0x28] sm:$0x7] }
  0x4f   :  { %1164 = vmatpush3.msra.mxu0 %v121_v45  ;;  %1249 = vmatprep.subr.mxu1 %v1396_v49  ;;  %v590_v45 = vld [vmem:[%s1744_s4] sm:$0xff]  ;;  %v662_v9 = vrot.slane %v661_v53, 2 }
  0x50   :  { %1165 = vmatprep.subr.mxu0 %v136_v46  ;;  %1250 = vmatpush3.msra.mxu1 %v404_v11  ;;  %v592_v46 = vld [vmem:[%s1744_s4 + $0x10] sm:$0xff] }
  0x51   :  { %1166 = vmatpush3.msra.mxu0 %v120_v47  ;;  %1251 = vmatprep.subr.mxu1 %v1396_v49  ;;  %v594_v47 = vld [vmem:[%s1744_s4 + $0x20] sm:$0xff] }
  0x52   :  { %390 = vmatmul.mubr.f32.vlgmr.msra.gmra.mxu0 %v1473_v13  ;;  %1258 = vmatprep.subr.mxu0 %v1396_v49  ;;  %v402_v13 = vld [vmem:[%s1745_s5] sm:$0xff]  ;;  %s1052_s5 = sshll.u32 %s1399_s19, 4  ;;  %s1053_s5 = int_to_ptr.vmem [resolvable:$true] %s1052_s5 }
  0x53   :  { %1260 = vmatprep.mubr.msk.f32.mxu0 %vm1397_vm1, %v1396_v49  ;;  %1252 = vmatpush3.msra.mxu1 %v403_v12  ;;  %s1368_s20 = scalar_lea.vmem %s1053_s5, 32  ;;  %p1373_p6 = scmp.lt.s32.totalorder %s1053_s5, %s1053_s5 }
  0x54   :  { %1253 = vmatprep.subr.mxu1 %v1396_v49  ;;  %1259 = vmatpush3.msra.mxu0 %v496_v17  ;;  %v663_v17 = vadd.f32 %v662_v9, %v661_v53  ;;  %v581_v53 = vld [vmem:[%s1743_s3 + $0x3] sm:$0x1]  ;;  %p1369_p5 = scmp.ne.s32.totalorder %s1053_s5, %s1368_s20  ;;  %p1374_p7 = scmp.lt.s32.totalorder %s1368_s20, %s1368_s20 }
  0x55   :  { %1254 = vmatpush3.msra.mxu1 %v402_v13  ;;  %1298 = vmatprep.subr.mxu0 %v1396_v49 }
  0x56   :  { %1263 = vmatprep.subr.mxu1 %v1396_v49  ;;  %p1375_p8 = por %p1374_p7, %p1373_p6 }
  0x58   :  { %p1376_p9 = pnand %p1375_p8, %p1369_p5 }
  0xf1   :  { %v1097_v57 = vpop.f32.mrf.mxu0 }
  0xf2   :  { %v1132_v58 = vpop.f32.mrf.mxu1 }
  0xf3   :  { %v1098_v59 = vpop.f32.mrf.mxu0 }
  0xf4   :  { %v1133_v60 = vpop.f32.mrf.mxu1  ;;  %v1099_v61 = vadd.f32 %v1098_v59, %v1097_v57  ;;  %v600_v57 = vld [vmem:[%s1744_s4 + $0x50] sm:$0xff]  ;;  %v604_v59 = vadd.f32 %v603_v52, %v590_v45  ;;  %v580_v45 = vld [vmem:[%s1743_s3 + $0x2] sm:$0x1] }
  0xf5   :  { %v1134_v62 = vadd.f32 %v1133_v60, %v1132_v58  ;;  %v601_v58 = vld [vmem:[%s1744_s4 + $0x58] sm:$0x7]  ;;  %v611_v60 = vsel %vm602_vm4, %v593_v43, 0.0  ;;  %v578_v43 = vld [vmem:[%s1743_s3] sm:$0x1] }
  0xf7   :  { %v322_v1 = vadd.f32 %v1134_v62, %v1099_v61  ;;  %v619_v61 = vsel %vm602_vm4, %v595_v44, 0.0  ;;  %v612_v62 = vadd.f32 %v611_v60, %v592_v46  ;;  %v579_v44 = vld [vmem:[%s1743_s3 + $0x1] sm:$0x1] }
  0xf9   :  { %v613_v6 = vrot.slane %v612_v62, 4 }
  0xfb   :  { %v614_v13 = vadd.f32 %v613_v6, %v612_v62 }
 0x112   :  { %v1167_v63 = vpop.f32.mrf.mxu0 }
 0x114   :  { %v1168_v0 = vpop.f32.mrf.mxu0 }
 0x115   :  { %v1169_v2 = vadd.f32 %v1168_v0, %v1167_v63  ;;  %v620_v63 = vadd.f32 %v619_v61, %v594_v47  ;;  %v627_v0 = vsel %vm602_vm4, %v597_v50, 0.0 }
 0x117   :  { %v392_v3 = vadd.f32 %v1169_v2, %v322_v1  ;;  %v635_v1 = vsel %vm602_vm4, %v599_v51, 0.0  ;;  %v605_v2 = vrot.slane %v604_v59, 4  ;;  %v621_v7 = vrot.slane %v620_v63, 4 }
 0x119   :  { %v395_v4 = vmul.f32 %v392_v3, %v392_v3  ;;  %v606_v10 = vadd.f32 %v605_v2, %v604_v59  ;;  %v583_v59 = vld [vmem:[%s1743_s3 + $0x5] sm:$0x1] }
 0x11b   :  { %v397_v5 = vsel %vm396_vm0, %v395_v4, 0.0  ;;  %v636_v4 = vadd.f32 %v635_v1, %v598_v56 }
 0x11c   :  { %398 = vadd.xlane.f32.xlu0 %v397_v5  ;;  %v643_v5 = vsel %vm602_vm4, %v601_v58, 0.0 }
 0x11d   :  { %v644_v8 = vadd.f32 %v643_v5, %v600_v57  ;;  %v637_v12 = vrot.slane %v636_v4, 4 }
 0x1a5   :  { %v399_v14 = vpop.xlane.xlu0 %398 }
 0x1a6   :  { %1342 = vrsqrt.f32 %v399_v14  ;;  %v622_v14 = vadd.f32 %v621_v7, %v620_v63 }
 0x1b3   :  { %v1343_v15 = vpop.eup %1342 }
 0x1b4   :  { %v1548_v16 = vmul.f32 %v1343_v15, %v392_v3  ;;  %v628_v3 = vadd.f32 %v627_v0, %v596_v48  ;;  %v645_v15 = vrot.slane %v644_v8, 4 }
 0x1b6   :  { %1256 = vmatmul.mubr.f32.vlgmr.msra.gmra.mxu1 %v1548_v16  ;;  %v629_v11 = vrot.slane %v628_v3, 4 }
 0x1b7   :  { %1295 = vmatprep.mubr.msk.f32.mxu1 %vm1397_vm1, %v1396_v49  ;;  %1264 = vmatpush3.msra.mxu1 %v747_v18 }
 0x1b8   :  { %1265 = vmatprep.subr.mxu1 %v1396_v49 }
 0x1b9   :  { %1266 = vmatpush3.msra.mxu1 %v746_v19 }
 0x1ba   :  { %1267 = vmatprep.subr.mxu1 %v1396_v49 }
 0x1bb   :  { %1268 = vmatpush3.msra.mxu1 %v745_v20 }
 0x1bc   :  { %1269 = vmatprep.subr.mxu1 %v1396_v49 }
 0x1bd   :  { %1270 = vmatpush3.msra.mxu1 %v744_v21 }
 0x1be   :  { %1271 = vmatprep.subr.mxu1 %v1396_v49 }
 0x1bf   :  { %1272 = vmatpush3.msra.mxu1 %v743_v22 }
 0x1c0   :  { %1273 = vmatprep.subr.mxu1 %v1396_v49 }
 0x1c1   :  { %1274 = vmatpush3.msra.mxu1 %v742_v23 }
 0x1c2   :  { %1275 = vmatprep.subr.mxu1 %v1396_v49 }
 0x1c3   :  { %1276 = vmatpush3.msra.mxu1 %v741_v24 }
 0x1c4   :  { %1277 = vmatprep.subr.mxu1 %v1396_v49 }
 0x1c5   :  { %1278 = vmatpush3.msra.mxu1 %v740_v25 }
 0x1c6   :  { %1279 = vmatprep.subr.mxu1 %v1396_v49 }
 0x1c7   :  { %1280 = vmatpush3.msra.mxu1 %v739_v26 }
 0x1c8   :  { %1281 = vmatprep.subr.mxu1 %v1396_v49 }
 0x1c9   :  { %1282 = vmatpush3.msra.mxu1 %v738_v27 }
 0x1ca   :  { %1283 = vmatprep.subr.mxu1 %v1396_v49 }
 0x1cb   :  { %1284 = vmatpush3.msra.mxu1 %v737_v28 }
 0x1cc   :  { %1285 = vmatprep.subr.mxu1 %v1396_v49 }
 0x1cd   :  { %1286 = vmatpush3.msra.mxu1 %v736_v29 }
 0x1ce   :  { %1287 = vmatprep.subr.mxu1 %v1396_v49 }
 0x1cf   :  { %1288 = vmatpush3.msra.mxu1 %v735_v30 }
 0x1d0   :  { %1289 = vmatprep.subr.mxu1 %v1396_v49 }
 0x1d1   :  { %1290 = vmatpush3.msra.mxu1 %v734_v31 }
 0x1d2   :  { %1291 = vmatprep.subr.mxu1 %v1396_v49 }
 0x276   :  { %v491_v34 = vpop.f32.mrf.mxu1 }
 0x277   :  { %v492_v35 = vadd.f32 %v1062_v33, %v491_v34 }
 0x278   :  { %v1257_v36 = vpop.f32.mrf.mxu1 }
 0x279   :  { %v495_v37 = vmax.f32 %v492_v35, 0.0 }
 0x27b   :  { %1261 = vmatmul.mubr.msk.f32.vlgmr.msra.gmra.mxu0 %vm504_vm2, %v495_v37 }
 0x27c   :  { %1299 = vmatpush3.msra.mxu0 %v747_v18  ;;  %1330 = vmatprep.mubr.msk.f32.mxu0 %vm1397_vm1, %v1396_v49  ;;  %v670_v18 = vunpack.c.0.s8 %v669_v55 }
 0x27d   :  { %1300 = vmatprep.subr.mxu0 %v1396_v49 }
 0x27e   :  { %1301 = vmatpush3.msra.mxu0 %v746_v19  ;;  %v607_v19 = vrot.slane %v606_v10, 2  ;;  %v1678_v34 = vsub.s32 %v670_v18, %v1464_v42 }
 0x27f   :  { %1302 = vmatprep.subr.mxu0 %v1396_v49 }
 0x280   :  { %1303 = vmatpush3.msra.mxu0 %v745_v20  ;;  %v630_v20 = vadd.f32 %v629_v11, %v628_v3  ;;  %v732_v11 = vld [vmem:[%s1749_s9] sm:$0xff] }
 0x281   :  { %1304 = vmatprep.subr.mxu0 %v1396_v49 }
 0x282   :  { %1305 = vmatpush3.msra.mxu0 %v744_v21  ;;  %v638_v21 = vadd.f32 %v637_v12, %v636_v4  ;;  %v733_v4 = vld [vmem:[%s1749_s9 + $0x8] sm:$0xff] }
 0x283   :  { %1306 = vmatprep.subr.mxu0 %v1396_v49  ;;  %1292 = vmatpush3.msra.mxu1 %v733_v4 }
 0x284   :  { %1307 = vmatpush3.msra.mxu0 %v743_v22  ;;  %v615_v22 = vrot.slane %v614_v13, 2  ;;  %1293 = vmatprep.subr.mxu1 %v1396_v49 }
 0x285   :  { %1308 = vmatprep.subr.mxu0 %v1396_v49  ;;  %1294 = vmatpush3.msra.mxu1 %v732_v11 }
 0x286   :  { %1309 = vmatpush3.msra.mxu0 %v742_v23  ;;  %v623_v23 = vrot.slane %v622_v14, 2 }
 0x287   :  { %1310 = vmatprep.subr.mxu0 %v1396_v49 }
 0x288   :  { %1311 = vmatpush3.msra.mxu0 %v741_v24  ;;  %v646_v24 = vadd.f32 %v645_v15, %v644_v8 }
 0x289   :  { %1312 = vmatprep.subr.mxu0 %v1396_v49 }
 0x28a   :  { %1313 = vmatpush3.msra.mxu0 %v740_v25  ;;  %v664_v25 = vrot.slane %v663_v17, 1 }
 0x28b   :  { %1314 = vmatprep.subr.mxu0 %v1396_v49 }
 0x28c   :  { %1315 = vmatpush3.msra.mxu0 %v739_v26  ;;  %v608_v26 = vadd.f32 %v607_v19, %v606_v10  ;;  %v665_v33 = vadd.f32 %v664_v25, %v663_v17 }
 0x28d   :  { %1316 = vmatprep.subr.mxu0 %v1396_v49 }
 0x28e   :  { %1317 = vmatpush3.msra.mxu0 %v738_v27  ;;  %v631_v27 = vrot.slane %v630_v20, 2  ;;  %v609_v35 = vrot.slane %v608_v26, 1  ;;  %v667_v41 = vcombine.high %v665_v33, %v665_v33  ;;  %v674_v47 = vrot.slane %v665_v33, %v1678_v34 }
 0x28f   :  { %1318 = vmatprep.subr.mxu0 %v1396_v49 }
 0x290   :  { %1319 = vmatpush3.msra.mxu0 %v737_v28  ;;  %v639_v28 = vrot.slane %v638_v21, 2  ;;  %v632_v36 = vadd.f32 %v631_v27, %v630_v20  ;;  %v610_v46 = vadd.f32 %v609_v35, %v608_v26  ;;  %v681_v57 = vrot.slane %v667_v41, %v1678_v34 }
 0x291   :  { %1320 = vmatprep.subr.mxu0 %v1396_v49  ;;  %v682_v58 = vcombine.high %v674_v47, %v674_v47  ;;  %v690_v2 = vrot.slane %v674_v47, %v1678_v34 }
 0x292   :  { %1321 = vmatpush3.msra.mxu0 %v736_v29  ;;  %v616_v29 = vadd.f32 %v615_v22, %v614_v13  ;;  %v640_v37 = vadd.f32 %v639_v28, %v638_v21  ;;  %v633_v51 = vrot.slane %v632_v36, 1  ;;  %v651_v56 = vadd.f32 %v610_v46, %v578_v43 }
 0x293   :  { %1322 = vmatprep.subr.mxu0 %v1396_v49  ;;  %v683_v1 = vcombine.high %v681_v57, %v681_v57  ;;  %v697_v3 = vrot.slane %v681_v57, %v1678_v34  ;;  %v704_v7 = vrot.slane %v682_v58, %v1678_v34  ;;  %v712_v10 = vcombine.high %v690_v2, %v690_v2 }
 0x294   :  { %1323 = vmatpush3.msra.mxu0 %v735_v30  ;;  %v624_v30 = vadd.f32 %v623_v23, %v622_v14  ;;  %v617_v38 = vrot.slane %v616_v29, 1  ;;  %v641_v52 = vrot.slane %v640_v37, 1  ;;  %v634_v60 = vadd.f32 %v633_v51, %v632_v36 }
 0x295   :  { %1324 = vmatprep.subr.mxu0 %v1396_v49  ;;  %v711_v9 = vrot.slane %v683_v1, %v1678_v34  ;;  %v713_v12 = vcombine.high %v704_v7, %v704_v7  ;;  %v720_v13 = vadd.f32 %v690_v2, %v651_v56  ;;  %v961_v51 = vsub.s32 0, %v1464_v42 }
 0x296   :  { %1325 = vmatpush3.msra.mxu0 %v734_v31  ;;  %v647_v31 = vrot.slane %v646_v24, 2  ;;  %v625_v39 = vrot.slane %v624_v30, 1  ;;  %v618_v48 = vadd.f32 %v617_v38, %v616_v29  ;;  %v642_v61 = vadd.f32 %v641_v52, %v640_v37  ;;  %v1063_v37 = vld [vmem:[%s1748_s8] ss:$0 sm:$0xff] }
 0x297   :  { %1326 = vmatprep.subr.mxu0 %v1396_v49  ;;  %v654_v5 = vadd.f32 %v634_v60, %v581_v53  ;;  %v726_v20 = vmul.f32 0.0625, %v720_v13 }
 0x298   :  { %v648_v40 = vadd.f32 %v647_v31, %v646_v24  ;;  %v626_v50 = vadd.f32 %v625_v39, %v624_v30  ;;  %v652_v62 = vadd.f32 %v618_v48, %v579_v44  ;;  %v655_v6 = vadd.f32 %v642_v61, %v582_v54  ;;  %1327 = vmatpush3.msra.mxu0 %v733_v4 }
 0x299   :  { %1328 = vmatprep.subr.mxu0 %v1396_v49  ;;  %v723_v19 = vadd.f32 %v713_v12, %v654_v5 }
 0x29a   :  { %v649_v55 = vrot.slane %v648_v40, 1  ;;  %v653_v63 = vadd.f32 %v626_v50, %v580_v45  ;;  %v721_v14 = vadd.f32 %v704_v7, %v652_v62  ;;  %1329 = vmatpush3.msra.mxu0 %v732_v11  ;;  %v724_v17 = vadd.f32 %v697_v3, %v655_v6 }
 0x29b   :  { %v729_v25 = vmul.f32 0.0625, %v723_v19 }
 0x29c   :  { %v650_v0 = vadd.f32 %v649_v55, %v648_v40  ;;  %v722_v15 = vadd.f32 %v712_v10, %v653_v63  ;;  %v727_v21 = vmul.f32 0.0625, %v721_v14  ;;  %v730_v23 = vmul.f32 0.0625, %v724_v17 }
 0x29d   :  { %v992_v63 = vrot.slane %v1548_v16, %v1678_v34  ;;  %v1032_v16 = vand.u32 127, %v158_v32 }
 0x29e   :  { %v656_v8 = vadd.f32 %v650_v0, %v583_v59  ;;  %v728_v22 = vmul.f32 0.0625, %v722_v15  ;;  %v754_v26 = vcombine.low %v726_v20, %v727_v21 }
 0x29f   :  { %v993_v0 = vcombine.high %v992_v63, %v992_v63  ;;  %v1000_v1 = vrot.slane %v992_v63, %v1678_v34  ;;  %v1035_v14 = vsub.s32 %v1032_v16, %v1464_v42 }
 0x2a0   :  { %v725_v18 = vadd.f32 %v711_v9, %v656_v8  ;;  %v755_v28 = vcombine.low %v728_v22, %v729_v25  ;;  %v763_v49 = vrot.slane %v754_v26, %v1678_v34 }
 0x2a1   :  { %v1007_v2 = vrot.slane %v993_v0, %v1678_v34  ;;  %v1011_v5 = vrot.slane %v1000_v1, %v961_v51 }
 0x2a2   :  { %v731_v24 = vmul.f32 0.0625, %v725_v18  ;;  %v770_v30 = vrot.slane %v755_v28, %v1678_v34 }
 0x2a3   :  { %v1015_v9 = vrot.slane %v1007_v2, %v961_v51 }
 0x2a4   :  { %v756_v27 = vcombine.low %v730_v23, %v731_v24  ;;  %v778_v31 = vcombine.low %v763_v49, %v770_v30 }
 0x2a6   :  { %v777_v29 = vrot.slane %v756_v27, %v1678_v34  ;;  %v785_v35 = vrot.slane %v778_v31, %v1678_v34 }
 0x2a8   :  { %v792_v33 = vrot.slane %v777_v29, %v1678_v34 }
 0x2aa   :  { %v793_v36 = vcombine.low %v785_v35, %v792_v33 }
 0x2ac   :  { %1296 = vmatmul.mubr.f32.vlgmr.msra.gmra.mxu1 %v793_v36 }
 0x33b   :  { %v574_v38 = vpop.f32.mrf.mxu0 }
 0x33c   :  { %v575_v39 = vadd.f32 %v1063_v37, %v574_v38 }
 0x33d   :  { %v1262_v40 = vpop.f32.mrf.mxu0 }
 0x33e   :  { %1331 = vmatmul.mubr.f32.vlgmr.msra.gmra.mxu0 %v575_v39 }
 0x36c   :  { %v861_v41 = vpop.f32.mrf.mxu1 }
 0x36e   :  { %v1297_v43 = vpop.f32.mrf.mxu1 }
 0x3fe   :  { %v931_v44 = vpop.f32.mrf.mxu0 }
 0x3ff   :  { %v935_v45 = vmul.f32 0.25, %v931_v44 }
 0x400   :  { %v1332_v46 = vpop.f32.mrf.mxu0 }
 0x401   :  { %v943_v47 = vrot.slane %v935_v45, %v1678_v34 }
 0x403   :  { %v944_v48 = vcombine.high %v943_v47, %v943_v47  ;;  %v951_v50 = vrot.slane %v943_v47, %v1678_v34 }
 0x405   :  { %v958_v52 = vrot.slane %v944_v48, %v1678_v34  ;;  %v962_v53 = vrot.slane %v951_v50, %v961_v51  ;;  %v1026_v34 = vstv %s1750_s10 }
 0x407   :  { %v966_v54 = vrot.slane %v958_v52, %v961_v51  ;;  %v969_v55 = vadd.f32 %v962_v53, %v861_v41 }
 0x409   :  { %v970_v56 = vadd.f32 %v966_v54, %v861_v41  ;;  %v971_v57 = vmul.f32 %v969_v55, %v969_v55 }
 0x40b   :  { %v974_v58 = vsel %vm973_vm5, %v971_v57, 0.0  ;;  %v972_v59 = vmul.f32 %v970_v56, %v970_v56 }
 0x40c   :  { %975 = vadd.xlane.f32.xlu0 %v974_v58 }
 0x40d   :  { %v977_v60 = vsel %vm973_vm5, %v972_v59, 0.0 }
 0x40e   :  { %978 = vadd.xlane.f32.xlu1 %v977_v60 }
 0x495   :  { %v976_v61 = vpop.xlane.xlu0 %975 }
 0x496   :  { %1344 = vrsqrt.f32 %v976_v61 }
 0x497   :  { %v979_v62 = vpop.xlane.xlu1 %978 }
 0x498   :  { %1346 = vrsqrt.f32 %v979_v62 }
 0x4a3   :  { %v1345_v3 = vpop.eup %1344 }
 0x4a4   :  { %v982_v4 = vmul.f32 %v1345_v3, %v969_v55 }
 0x4a5   :  { %v1347_v6 = vpop.eup %1346 }
 0x4a6   :  { %v1018_v7 = vmul.f32 %v1011_v5, %v982_v4  ;;  %v983_v8 = vmul.f32 %v1347_v6, %v970_v56 }
 0x4a8   :  { %v1020_v10 = vsel %vm973_vm5, %v1018_v7, 0.0  ;;  %v1019_v11 = vmul.f32 %v1015_v9, %v983_v8 }
 0x4a9   :  { %1021 = vadd.xlane.f32.xlu1 %v1020_v10 }
 0x4aa   :  { %v1023_v12 = vsel %vm973_vm5, %v1019_v11, 0.0 }
 0x4ab   :  { %1024 = vadd.xlane.f32.xlu0 %v1023_v12 }
 0x532   :  { %v1022_v13 = vpop.xlane.xlu1 %1021 }
 0x533   :  { %v1027_v15 = vmul.f32 %v1026_v34, %v1022_v13 }
 0x534   :  { %v1025_v17 = vpop.xlane.xlu0 %1024 }
 0x535   :  { %v1028_v18 = vmul.f32 %v1026_v34, %v1025_v17  ;;  %v1036_v19 = vrot.slane %v1027_v15, %v1035_v14 }
 0x537   :  { %v1040_v20 = vrot.slane %v1028_v18, %v1035_v14 }
 0x539   :  { %v1042_v21 = vsel %vm1041_vm6, %v1040_v20, %v1036_v19 }
 0x53a   :  { %1045 = vst.msk [vmem:[#allocation6] sm:$0x3] %vm1044_vm7, %v1042_v21 }
 0x53b   :  { %1379 = shalt.err (!%p1376_p9)
}
 0x53c   :  { %1055 = dma.vmem_to_hbm [thread:$0]  %s1053_s5, 32, %s1751_s11, [#allocation5]  }
 0x53d   :  { %1390 = dma.done.wait [#allocation5], 32  }
 0x53e   :  { %1391 = vsyncadd [#allocation5], 4294967264 }
 0x53f   :  { %1059 = vsyncpa [#allocation4], 1 }
 0x540   :  { %1060 = vsyncpa [#allocation5], 1 }

</bundles_post_ra>
